<compile_context>
chip_gen: v5e
topology: v5e:2x2
jax: 0.10.0
libtpu: 0.0.40
codegen_flags: <defaults>
</compile_context>

<pallas_src>
import jax
import jax.numpy as jnp
from jax.experimental import pallas as pl
from jax.experimental.pallas import tpu as pltpu


def _round_up(v, m):
    return (v + m - 1) // m * m


def _vmem_capacity_bytes():
    try:
        return int(pltpu.get_tpu_info().vmem_capacity_bytes)
    except Exception:
        return 64 * 1024 * 1024  # conservative (v7x per-TC)


def _pick_q_tile(q, cr, cout, itemsize, cap):
    """Lane-tile (multiple of 128) sized from the chip's VMEM capacity."""
    q_needed = _round_up(q, 128)
    # Per double-buffered stream budget: ~8 MiB on 128 MiB chips, ~4 MiB on v7x.
    stream_cap = max(cap // 16, 2 << 20)
    per_lane = 2 * (cr + cout) * itemsize + cout * 4   # dbl-buf in/out + f32 acc
    qt = (stream_cap // per_lane) // 128 * 128
    # Bound the f32 accumulator (Cout, Qtile) to ~1 MiB and cap tile length.
    qt = min(qt, max(128, ((1 << 20) // (4 * cout)) // 128 * 128), 4096)
    qt = max(128, min(qt, q_needed))
    return qt


def conv_layer(x, weight, bias, *, stride=1):
    """x: (B, Cin, H, W). weight: (Cout, Cin, K, K). bias: (Cout,). NCHW out."""
    B, Cin, H, W = x.shape
    Cout, Cin_w, K, K2 = weight.shape
    assert Cin == Cin_w and K == K2
    pad = K // 2

    # ReflectionPad2d(K//2) — data movement only, done in the wrapper.
    xp = jnp.pad(x, ((0, 0), (0, 0), (pad, pad), (pad, pad)), mode="reflect")
    Hp, Wp = H + 2 * pad, W + 2 * pad
    Ho = (Hp - K) // stride + 1
    Wo = (Wp - K) // stride + 1
    Q = Ho * Wo
    Cr = Cin * K * K

    # im2col at the strided output positions only (no stride^2 over-compute).
    # Contraction-axis ordering is (cin, ky, kx) to match weight.reshape.
    taps = []
    for ky in range(K):
        for kx in range(K):
            taps.append(
                xp[:, :, ky:ky + stride * (Ho - 1) + 1:stride,
                         kx:kx + stride * (Wo - 1) + 1:stride])  # (B, Cin, Ho, Wo)
    patches = jnp.stack(taps, axis=2)                  # (B, Cin, K*K, Ho, Wo)
    patches = patches.reshape(B, Cr, Q)

    itemsize = jnp.dtype(x.dtype).itemsize
    cap = _vmem_capacity_bytes()
    Qtile = _pick_q_tile(Q, Cr, Cout, itemsize, cap)
    Qpad = _round_up(Q, Qtile)
    if Qpad != Q:
        patches = jnp.pad(patches, ((0, 0), (0, 0), (0, Qpad - Q)))

    wk = weight.reshape(Cout, Cr).astype(x.dtype)       # (Cout, Cin*K*K)
    b2 = bias.reshape(Cout, 1).astype(jnp.float32)

    nQ = Qpad // Qtile
    grid = (B, nQ)

    def kernel(w_ref, b_ref, p_ref, o_ref):
        # Single MXU matmul per tile; bias added once (no per-tap work).
        acc = jnp.dot(w_ref[...], p_ref[0], preferred_element_type=jnp.float32)
        o_ref[0] = (acc + b_ref[...]).astype(o_ref.dtype)

    # Honest VMEM budget: double-buffered in/out blocks, weights, bias,
    # the f32 accumulator, plus slack; clamp against the chip's capacity.
    needed = (2 * Cr * Qtile * itemsize          # input tile, double-buffered
              + 2 * Cout * Qtile * itemsize      # output tile, double-buffered
              + 2 * Cout * Cr * itemsize         # weights
              + 2 * Cout * 4                     # bias
              + Cout * Qtile * 4                 # f32 accumulator / temporaries
              + (4 << 20))                       # slack
    vmem_limit = int(min(max(needed, 32 << 20), int(0.9 * cap)))

    out_flat = pl.pallas_call(
        kernel,
        out_shape=jax.ShapeDtypeStruct((B, Cout, Qpad), x.dtype),
        grid_spec=pltpu.PrefetchScalarGridSpec(
            num_scalar_prefetch=0,
            grid=grid,
            in_specs=[
                pl.BlockSpec((Cout, Cr), lambda b, q: (0, 0)),
                pl.BlockSpec((Cout, 1), lambda b, q: (0, 0)),
                pl.BlockSpec((1, Cr, Qtile), lambda b, q: (b, 0, q)),
            ],
            out_specs=pl.BlockSpec((1, Cout, Qtile), lambda b, q: (b, 0, q)),
        ),
        compiler_params=pltpu.CompilerParams(
            dimension_semantics=("parallel", "parallel"),
            vmem_limit_bytes=vmem_limit,
        ),
    )(wk, b2, patches)

    # Only the small lane-padding tail needs cropping; reshape to NCHW.
    out = out_flat[:, :, :Q].reshape(B, Cout, Ho, Wo)
    return out


def conv_layer_ref(x, weight, bias, *, stride=1):
    """Pure-JAX reference matching the PyTorch ConvLayer forward."""
    K = weight.shape[-1]
    pad = K // 2
    xp = jnp.pad(x, ((0, 0), (0, 0), (pad, pad), (pad, pad)), mode="reflect")
    out = jax.lax.conv_general_dilated(
        xp, weight, window_strides=(stride, stride), padding="VALID",
        dimension_numbers=("NCHW", "OIHW", "NCHW"))
    return out + bias[None, :, None, None]


if __name__ == "__main__":
    # Small shapes consistent with the module: B=2, Cin=4, Cout=8, 3x3, 16x16.
    B, Cin, Cout, K = 2, 4, 8, 3
    H = W = 16

    key = jax.random.PRNGKey(0)
    kx_, kw_, kb_ = jax.random.split(key, 3)
    x = jax.random.normal(kx_, (B, Cin, H, W), dtype=jnp.float32)
    fan_in = Cin * K * K
    w = jax.random.normal(kw_, (Cout, Cin, K, K), dtype=jnp.float32) * (1.0 / fan_in) ** 0.5
    b = jax.random.normal(kb_, (Cout,), dtype=jnp.float32) * 0.1

    for stride in (1, 2):
        out = jax.block_until_ready(conv_layer(x, w, b, stride=stride))
        ref = conv_layer_ref(x, w, b, stride=stride)
        assert out.shape == ref.shape, (stride, out.shape, ref.shape)
        assert jnp.allclose(out, ref, atol=1e-4, rtol=1e-4), f"mismatch stride={stride}"

    print("KERNEL_OK")
</pallas_src>

<mosaic_0001>
module attributes {stable_mosaic.version = 11 : i64} {
  func.func @kernel(%arg0: i32, %arg1: i32, %arg2: memref<8x36xf32, #tpu.memory_space<vmem>>, %arg3: memref<8x1xf32, #tpu.memory_space<vmem>>, %arg4: memref<1x36x256xf32, #tpu.memory_space<vmem>>, %arg5: memref<1x8x256xf32, #tpu.memory_space<vmem>>) attributes {dimension_semantics = [#tpu.dimension_semantics<parallel>, #tpu.dimension_semantics<parallel>], iteration_bounds = array<i64: 2, 1>, scalar_prefetch = 0 : i64, scratch_operands = 0 : i64, tpu.core_type = #tpu.core_type<tc>, window_params = [{pipeline_mode = #tpu.pipeline_mode<synchronous>, transform_indices = @transform_0, window_bounds = array<i64: 8, 36>}, {pipeline_mode = #tpu.pipeline_mode<synchronous>, transform_indices = @transform_1, window_bounds = array<i64: 8, 1>}, {transform_indices = @transform_2, window_bounds = array<i64: 1, 36, 256>}, {transform_indices = @transform_3, window_bounds = array<i64: 1, 8, 256>}]} {
    %c0 = arith.constant 0 : index
    %c0_0 = arith.constant 0 : index
    %0 = vector.load %arg2[%c0, %c0_0] : memref<8x36xf32, #tpu.memory_space<vmem>>, vector<8x36xf32>
    %c0_1 = arith.constant 0 : index
    %c0_2 = arith.constant 0 : index
    %c0_3 = arith.constant 0 : index
    %1 = vector.load %arg4[%c0_1, %c0_2, %c0_3] : memref<1x36x256xf32, #tpu.memory_space<vmem>>, vector<1x36x256xf32>
    %2 = vector.shape_cast %1 : vector<1x36x256xf32> to vector<36x256xf32>
    %cst = arith.constant dense<0.000000e+00> : vector<8x256xf32>
    %3 = tpu.matmul %0, %2, %cst {dimension_numbers = #tpu.dot_dimension_numbers<[1], [0], [0], [1], [0, 0, 1, 1], [], []>} : vector<8x36xf32>, vector<36x256xf32>, vector<8x256xf32> -> vector<8x256xf32>
    %c0_4 = arith.constant 0 : index
    %c0_5 = arith.constant 0 : index
    %4 = vector.load %arg3[%c0_4, %c0_5] : memref<8x1xf32, #tpu.memory_space<vmem>>, vector<8x1xf32>
    %5 = vector.broadcast %4 : vector<8x1xf32> to vector<8x256xf32>
    %6 = arith.addf %3, %5 : vector<8x256xf32>
    %c0_6 = arith.constant 0 : index
    %c0_7 = arith.constant 0 : index
    %c0_8 = arith.constant 0 : index
    %7 = vector.load %arg5[%c0_6, %c0_7, %c0_8] : memref<1x8x256xf32, #tpu.memory_space<vmem>>, vector<1x8x256xf32>
    %8 = vector.shape_cast %7 : vector<1x8x256xf32> to vector<8x256xf32>
    %9 = vector.shape_cast %6 : vector<8x256xf32> to vector<1x8x256xf32>
    tpu.vector_store %arg5[%c0_6, %c0_7, %c0_8], %9 {strides = array<i32>} : memref<1x8x256xf32, #tpu.memory_space<vmem>>, vector<1x8x256xf32>,
    return
  }
  func.func @transform_0(%arg0: i32, %arg1: i32) -> (i32, i32) {
    %c0_i32 = arith.constant 0 : i32
    %c0_i32_0 = arith.constant 0 : i32
    %c0_i32_1 = arith.constant 0 : i32
    return %c0_i32, %c0_i32_0 : i32, i32
  }
  func.func @transform_1(%arg0: i32, %arg1: i32) -> (i32, i32) {
    %c0_i32 = arith.constant 0 : i32
    %c0_i32_0 = arith.constant 0 : i32
    %c0_i32_1 = arith.constant 0 : i32
    return %c0_i32, %c0_i32_0 : i32, i32
  }
  func.func @transform_2(%arg0: i32, %arg1: i32) -> (i32, i32, i32) {
    %c0_i32 = arith.constant 0 : i32
    %c0_i32_0 = arith.constant 0 : i32
    return %arg0, %c0_i32, %arg1 : i32, i32, i32
  }
  func.func @transform_3(%arg0: i32, %arg1: i32) -> (i32, i32, i32) {
    %c0_i32 = arith.constant 0 : i32
    %c0_i32_0 = arith.constant 0 : i32
    return %arg0, %c0_i32, %arg1 : i32, i32, i32
  }
}

</mosaic_0001>

<bundles_post_ra>
// kernel: tpu_custom_call.1
= control target key start
LH: loop header
LB: loop body
LE: loop exit
PB: predicated region body
PF: predicated region fallthrough
CT: control target
= control target key end

     0   :  { %8 = vsyncpa [#allocation3], 0  ;;  %s644_s0 = inlined_call_operand.vmem [shape: f32[8,36], index: 0, kind: input, shape index: {}]   ;;  %s645_s1 = inlined_call_operand.vmem [shape: f32[8,1], index: 1, kind: input, shape index: {}]   ;;  %s646_s2 = inlined_call_operand.vmem [shape: f32[2,36,256], index: 2, kind: input, shape index: {}]   ;;  %s647_s3 = inlined_call_operand.hbm [shape: f32[2,8,256], index: 3, kind: output, shape index: {}]  }
   0x1   :  { %10 = vsyncpa [#allocation3 + $0x1], 0  ;;  %s541_s12 = smov 0   ;;  %s543_s13 = smov 0  }
   0x2   :  { %s545_s14 = smov 0   ;;  %s547_s15 = smov 0  }
   0x3   :  { %s549_s16 = smov 0   ;;  %s551_s17 = smov 0  }
   0x4 LB: > { %s365_s18 = sadd.s32 4294967295, %s518_s17   ;;  %s366_s19 = sadd.s32 4294967294, %s518_s17   ;;  %s518_s17 = sphi %s551_s17, %s16_s17   ;;  %s514_s16 = sphi %s549_s16, %s654_s16   ;;  %s510_s15 = sphi %s547_s15, %s653_s15   ;;  %s506_s14 = sphi %s545_s14, %s652_s14   ;;  %s502_s13 = sphi %s543_s13, %s651_s13   ;;  %s498_s12 = sphi %s541_s12, %s650_s12  }
   0x5   : > { %s28_s20 = sadd.s32 1, %s514_s16  ;;  %s107_s21 = sadd.s32 1, %s506_s14 }
   0x6   : > { %p30_p0 = scmp.ge.s32.totalorder %s28_s20, 2  ;;  %p117_p1 = scmp.ne.s32.totalorder %s506_s14, %s502_s13 }
   0x7   : > { %p118_p2 = scmp.eq.s32.totalorder %s365_s18, 1  ;;  %p123_p3 = scmp.ne.s32.totalorder %s502_s13, %s498_s12 }
   0x8   : > { %s656_s20 = smov (%p30_p0, %s28_s20), 0  ;;  %p124_p5 = scmp.eq.s32.totalorder %s366_s19, 1 }
   0x9   : > { %p581_p4 = por %p118_p2, %p117_p1  ;;  %s102_s23 = ssub.s32 %s514_s16, %s656_s20 }
   0xa   : > { %p369_p6 = scmp.ge.s32.totalorder %s518_s17, 1  ;;  %p105_p7 = scmp.eq.s32.totalorder %s102_s23, 0 }
   0xb   : > { %p588_p8 = por %p124_p5, %p123_p3  ;;  %p161_p9 = scmp.lt.s32.totalorder %s518_s17, 3 }
   0xc   : > { %s594_s25 = scalar_select %p105_p7, %s506_s14, %s107_s21  }
   0xd   : > { %p162_p10 = pnand %p369_p6, %p161_p9 }
   0xe   : > { %p190_p11 = scmp.lt.s32.totalorder (!%p162_p10), %s510_s15, 1  ;;  %s186_s8 = sand.u32 (!%p162_p10), 1, %s502_s13  }
   0xf   : > { %165 = sbr.rel (%p162_p10) target bundleno = 167 (0xa7), region = 32  ;;  %s370_s9 = sshll.u32 (!%p162_p10), %s186_s8, 4 }
  0x10   : > { %s381_s10 = sshll.u32 (!%p162_p10), %s510_s15, 4  ;;  %s188_s21 = scalar_lea.vmem (!%p162_p10), [#allocation2], %s370_s9 }
  0x11   : > { %s284_s19 = scalar_lea.hbm (!%p162_p10), %s647_s3, %s381_s10  ;;  %s286_s23 = sshll.u32 (!%p162_p10), %s188_s21, 4  ;;  %s287_s23 = int_to_ptr.vmem [resolvable:$true] %s286_s23 }
  0x12   : > { %s288_s26 = sshll.u32 (!%p162_p10), %s284_s19, 4  ;;  %s271_s27 = scalar_lea.sflag (!%p162_p10), [#allocation3], %s186_s8  ;;  %s289_s26 = int_to_ptr.hbm [resolvable:$true] %s288_s26 }
  0x13   : > { %s460_s4 = scalar_lea.hbm (!%p162_p10), %s647_s3, 32 }
  0x14   : > { %v211_v0 = vld [vmem:[%s645_s1] sm:$0xff]  ;;  %v520_v1 = vmov 0   ;;  %s191_s28 = scalar_select %p190_p11, %s510_s15, 1  ;;  %vm221_vm0 = vcmask 1043456   ;;  %vm217_vm1 = vcmask 293888  }
  0x15   : > { %439 = vset.pattern.permute.xlu0 %v520_v1  ;;  %v200_v12 = vld [vmem:[%s644_s0] sm:$0xff] }
  0x16   : > { %214 = vperm.xlu0 %439, %v211_v0   ;;  %s382_s29 = smul.u32 80, %s191_s28  ;;  %s454_s28 = sshra.s32 %s289_s26, 4  ;;  %s455_s28 = int_to_ptr.hbm [resolvable:$true] %s454_s28 }
  0x17   : > { %s456_s15 = scalar_lea.hbm %s455_s28, 16  ;;  %p461_p1 = scmp.lt.s32.totalorder %s455_s28, %s647_s3 }
  0x18   : > { %s197_s5 = scalar_lea.vmem %s646_s2, %s382_s29  ;;  %p457_p12 = scmp.ne.s32.totalorder %s455_s28, %s456_s15 }
  0x19   : > { %v209_v2 = vld [vmem:[%s197_s5 + $0x40] sm:$0xf]  ;;  %v210_v3 = vld [vmem:[%s197_s5 + $0x48] sm:$0xf]  ;;  %v207_v4 = vld [vmem:[%s197_s5 + $0x30] sm:$0xff]  ;;  %p462_p2 = scmp.lt.s32.totalorder %s460_s4, %s456_s15 }
  0x1a   : > { %372 = vmatpush.msk.msra.mxu0 %vm221_vm0, %v209_v2  ;;  %374 = vmatpush.msk.msra.mxu1 %vm221_vm0, %v210_v3  ;;  %v208_v5 = vld [vmem:[%s197_s5 + $0x38] sm:$0xff]  ;;  %v205_v6 = vld [vmem:[%s197_s5 + $0x20] sm:$0xff]  ;;  %v206_v7 = vld [vmem:[%s197_s5 + $0x28] sm:$0xff]  ;;  %p458_p13 = pnand %p457_p12, %p581_p4 }
  0x1b   : > { %v203_v8 = vld [vmem:[%s197_s5 + $0x10] sm:$0xff]  ;;  %v204_v9 = vld [vmem:[%s197_s5 + $0x18] sm:$0xff]  ;;  %v201_v10 = vld [vmem:[%s197_s5] sm:$0xff]  ;;  %p463_p3 = por %p462_p2, %p461_p1 }
  0x1c   : > { %240 = vmatpush.msra.mxu0 %v207_v4  ;;  %260 = vmatpush.msra.mxu1 %v208_v5  ;;  %v202_v11 = vld [vmem:[%s197_s5 + $0x8] sm:$0xff]  ;;  %p459_p0 = pneg %p458_p13 }
  0x1e   : > { %241 = vmatpush.msra.mxu0 %v205_v6  ;;  %261 = vmatpush.msra.mxu1 %v206_v7  ;;  %p464_p5 = pnand %p463_p3, %p459_p0 }
  0x20   : > { %242 = vmatpush.msra.mxu0 %v203_v8  ;;  %262 = vmatpush.msra.mxu1 %v204_v9 }
  0x22   : > { %243 = vmatpush.msra.mxu0 %v201_v10  ;;  %263 = vmatpush.msra.mxu1 %v202_v11 }
  0x23   : > { %373 = vmatmul.msk.f32.vlgmr.msra.gmra.mxu0 %vm217_vm1, %v200_v12  ;;  %375 = vmatmul.msk.f32.vlgmr.msra.gmra.mxu1 %vm217_vm1, %v200_v12 }
  0x88   : > { %v215_v13 = vpop.permute.xlu0 %214 }
  0xa0   : > { %v245_v14 = vpop.f32.mrf.mxu0  ;;  %v265_v15 = vpop.f32.mrf.mxu1 }
  0xa1   : > { %v246_v16 = vadd.f32 %v245_v14, %v215_v13  ;;  %v266_v17 = vadd.f32 %v265_v15, %v215_v13 }
  0xa3   : > { %268 = vst [vmem:[%s188_s21] sm:$0xff] %v246_v16 }
  0xa4   : > { %269 = vst [vmem:[%s188_s21 + $0x8] sm:$0xff] %v266_v17 }
  0xa5   : > { %467 = shalt.err (!%p464_p5)
}
  0xa6   : > { %383 = dma.vmem_to_hbm [thread:$0]  (%p581_p4), %s287_s23, 256, %s289_s26, %s271_s27  }
  0xa7 PF: > { %p389_p6 = scmp.ge.s32.totalorder %s518_s17, 2  ;;  %s300_s7 = sand.u32 1, %s498_s12  }
  0xa8   : > { %s301_s8 = scalar_lea.sflag [#allocation3], %s300_s7 }
  0xa9   : > { %p386_p7 = pnand %p389_p6, %p588_p8 }
  0xab   : > { %p387_p9 = pneg %p386_p7 }
  0xad   : > { %493 = dma.done.wait (%p387_p9), %s301_s8, 256  }
  0xae   : > { %495 = vsyncadd (%p387_p9), %s301_s8, 4294967040  ;;  %s16_s17 = sadd.s32 1, %s518_s17   ;;  %s650_s12 = smov %s502_s13 }
  0xaf   : > { %p13_p10 = scmp.ge.s32.totalorder %s16_s17, 4   ;;  %s651_s13 = smov %s506_s14 }
  0xb0   : > { %s652_s14 = smov %s594_s25  ;;  %s653_s15 = smov %s514_s16 }
  0xb1   : > { %s654_s16 = smov %s656_s20  ;;  %15 = sbr.rel (!%p13_p10) target bundleno = 4 (0x4), region = 67 }
  0xb6   :  { %307 = vsyncpa [#allocation3], 1 }
  0xb7   :  { %309 = vsyncpa [#allocation3 + $0x1], 1 }

</bundles_post_ra>
